<compile_context>
chip_gen: v5e
topology: v5e:2x2
jax: 0.10.0
libtpu: 0.0.40
codegen_flags: <defaults>
</compile_context>

<pallas_src>
import math

import jax
import jax.numpy as jnp
from jax.experimental import pallas as pl
from jax.experimental.pallas import tpu as pltpu


def _pe_add_kernel(x_ref, pe_ref, o_ref):
    # x_ref / o_ref: (bb, ts, d_model) tile; pe_ref: (ts, d_model) tile (x.dtype).
    # TODO(synk): training-mode dropout would need pltpu.prng_seed /
    # pltpu.prng_random_bits + a Bernoulli mask; eval mode is identity.
    o_ref[...] = (x_ref[...] + pe_ref[...][None, :, :]).astype(o_ref.dtype)


def _round_up(x, m):
    return ((x + m - 1) // m) * m


def _choose_tiles(B, S, d_model, itemsize, *, max_ts=512,
                  target_tile_bytes=2 << 20, vmem_budget=24 << 20):
    """Pick (bb, ts): batch rows per block and seq rows per block.

    Targets a >= ~2 MiB x-tile for HBM-roofline streaming while keeping the
    double-buffered footprint (2 x (x + out + pe)) under `vmem_budget`, which
    fits the v7x 64 MiB VMEM with headroom (v5e/v6e have 128 MiB)."""
    ts = min(max_ts, _round_up(S, 8))          # multiple of 8 (sublane rule)

    def buf_bytes(bb, ts):
        return 2 * (2 * bb * ts * d_model + ts * d_model) * itemsize

    row_bytes = ts * d_model * itemsize
    bb = max(1, min(B, target_tile_bytes // max(1, row_bytes)))
    while bb > 1 and buf_bytes(bb, ts) > vmem_budget:
        bb -= 1
    while ts > 8 and buf_bytes(bb, ts) > vmem_budget:
        ts = max(8, _round_up(ts // 2, 8))
    return bb, ts


def make_sinusoidal_pe(max_len, d_model, dtype=jnp.float32):
    """Same table as the PyTorch module's register_buffer('pe', ...)."""
    position = jnp.arange(max_len, dtype=jnp.float32)[:, None]            # (L, 1)
    div_term = jnp.exp(
        jnp.arange(0, d_model, 2, dtype=jnp.float32)
        * (-math.log(10000.0) / d_model))                                 # (D/2,)
    angles = position * div_term                                          # (L, D/2)
    # even columns <- sin, odd columns <- cos (interleaved)
    pe = jnp.stack([jnp.sin(angles), jnp.cos(angles)], axis=-1)           # (L, D/2, 2)
    return pe.reshape(max_len, d_model).astype(dtype)


def positional_encoding(x, pe, *, donate_x=False):
    """x: [B, S, d_model]; pe: [max_len, d_model] (max_len >= S)."""
    B, S, d_model = x.shape
    assert pe.shape[0] >= S and pe.shape[1] == d_model

    # pe[:, :x.size(1)] in the torch forward; keep the whole path in x.dtype.
    pe_s = pe[:S].astype(x.dtype)

    itemsize = jnp.dtype(x.dtype).itemsize
    bb, ts = _choose_tiles(B, S, d_model, itemsize)
    grid = (pl.cdiv(S, ts), pl.cdiv(B, bb))        # batch innermost: pe stays resident

    # Real traffic after the grid reorder: x read + out write + ONE pe read.
    bytes_accessed = (x.size * itemsize                # read x
                      + x.size * itemsize              # write out
                      + pe_s.size * itemsize)          # read pe (once)
    cost = pl.CostEstimate(flops=B * S * d_model,      # one add per element
                           transcendentals=0,
                           bytes_accessed=bytes_accessed)

    kwargs = {}
    if donate_x:
        # Only safe when the caller does not reuse x after this call.
        kwargs["input_output_aliases"] = {0: 0}

    out = pl.pallas_call(
        _pe_add_kernel,
        out_shape=jax.ShapeDtypeStruct((B, S, d_model), x.dtype),
        grid_spec=pltpu.PrefetchScalarGridSpec(
            num_scalar_prefetch=0,
            grid=grid,
            in_specs=[
                pl.BlockSpec((bb, ts, d_model), lambda s, b: (b, s, 0)),  # x tile
                pl.BlockSpec((ts, d_model), lambda s, b: (s, 0)),         # pe tile
            ],
            out_specs=pl.BlockSpec((bb, ts, d_model), lambda s, b: (b, s, 0)),
        ),
        compiler_params=pltpu.CompilerParams(
            dimension_semantics=("parallel", "parallel"),
            vmem_limit_bytes=48 * 1024 * 1024),
        cost_estimate=cost,
        **kwargs,
    )(x, pe_s)
    return out


if __name__ == "__main__":
    # Small, lane-dense shapes: d_model multiple of 128, seq multiple of 8.
    B, S, d_model, max_len = 2, 16, 128, 64

    key = jax.random.PRNGKey(0)
    x = jax.random.normal(key, (B, S, d_model), dtype=jnp.float32)

    pe = make_sinusoidal_pe(max_len, d_model)

    out = positional_encoding(x, pe)
    out = jax.block_until_ready(out)

    # Reference: forward() in eval mode (dropout = identity).
    ref = x + pe[None, :S, :]

    assert out.shape == (B, S, d_model)
    assert jnp.allclose(out, ref, atol=1e-6, rtol=1e-6)

    print("KERNEL_OK")
</pallas_src>

<mosaic_0001>
module attributes {stable_mosaic.version = 11 : i64} {
  func.func @_pe_add_kernel(%arg0: i32, %arg1: i32, %arg2: memref<2x16x128xf32, #tpu.memory_space<vmem>>, %arg3: memref<16x128xf32, #tpu.memory_space<vmem>>, %arg4: memref<2x16x128xf32, #tpu.memory_space<vmem>>) attributes {dimension_semantics = [#tpu.dimension_semantics<parallel>, #tpu.dimension_semantics<parallel>], iteration_bounds = array<i64: 1, 1>, scalar_prefetch = 0 : i64, scratch_operands = 0 : i64, tpu.core_type = #tpu.core_type<tc>, window_params = [{transform_indices = @transform_0, window_bounds = array<i64: 2, 16, 128>}, {transform_indices = @transform_1, window_bounds = array<i64: 16, 128>}, {transform_indices = @transform_2, window_bounds = array<i64: 2, 16, 128>}]} {
    %c0 = arith.constant 0 : index
    %c0_0 = arith.constant 0 : index
    %c0_1 = arith.constant 0 : index
    %0 = vector.load %arg2[%c0, %c0_0, %c0_1] : memref<2x16x128xf32, #tpu.memory_space<vmem>>, vector<2x16x128xf32>
    %c0_2 = arith.constant 0 : index
    %c0_3 = arith.constant 0 : index
    %1 = vector.load %arg3[%c0_2, %c0_3] : memref<16x128xf32, #tpu.memory_space<vmem>>, vector<16x128xf32>
    %2 = vector.shape_cast %1 : vector<16x128xf32> to vector<1x16x128xf32>
    %3 = vector.broadcast %2 : vector<1x16x128xf32> to vector<2x16x128xf32>
    %4 = arith.addf %0, %3 : vector<2x16x128xf32>
    %c0_4 = arith.constant 0 : index
    %c0_5 = arith.constant 0 : index
    %c0_6 = arith.constant 0 : index
    %5 = vector.load %arg4[%c0_4, %c0_5, %c0_6] : memref<2x16x128xf32, #tpu.memory_space<vmem>>, vector<2x16x128xf32>
    tpu.vector_store %arg4[%c0_4, %c0_5, %c0_6], %4 {strides = array<i32>} : memref<2x16x128xf32, #tpu.memory_space<vmem>>, vector<2x16x128xf32>,
    return
  }
  func.func @transform_0(%arg0: i32, %arg1: i32) -> (i32, i32, i32) {
    %c0_i32 = arith.constant 0 : i32
    %c0_i32_0 = arith.constant 0 : i32
    return %arg1, %arg0, %c0_i32 : i32, i32, i32
  }
  func.func @transform_1(%arg0: i32, %arg1: i32) -> (i32, i32) {
    %c0_i32 = arith.constant 0 : i32
    %c0_i32_0 = arith.constant 0 : i32
    return %arg0, %c0_i32 : i32, i32
  }
  func.func @transform_2(%arg0: i32, %arg1: i32) -> (i32, i32, i32) {
    %c0_i32 = arith.constant 0 : i32
    %c0_i32_0 = arith.constant 0 : i32
    return %arg1, %arg0, %c0_i32 : i32, i32, i32
  }
}

</mosaic_0001>

<bundles_post_ra>
// kernel: tpu_custom_call.1
= control target key start
LH: loop header
LB: loop body
LE: loop exit
PB: predicated region body
PF: predicated region fallthrough
CT: control target
= control target key end

     0   :  { %7 = vsyncpa [#allocation3], 0  ;;  %s199_s0 = inlined_call_operand.hbm [shape: f32[2,16,128], index: 0, kind: input, shape index: {}]   ;;  %s200_s1 = inlined_call_operand.hbm [shape: f32[16,128], index: 1, kind: input, shape index: {}]   ;;  %s201_s2 = inlined_call_operand.hbm [shape: f32[2,16,128], index: 2, kind: output, shape index: {}]  }
   0x1   :  { %8 = vsyncpa [#allocation6], 0 }
   0x2   :  { %9 = vsyncpa [#allocation4], 0  ;;  %s14_s11 = sshll.u32 %s199_s0, 4  ;;  %s161_s12 = smov [#allocation2]   ;;  %s15_s11 = int_to_ptr.hbm [resolvable:$true] %s14_s11 }
   0x3   :  { %s16_s13 = sshll.u32 %s161_s12, 4  ;;  %s27_s16 = sshll.u32 %s200_s1, 4  ;;  %s17_s13 = int_to_ptr.vmem [resolvable:$true] %s16_s13  ;;  %s28_s16 = int_to_ptr.hbm [resolvable:$true] %s27_s16 }
   0x4   :  { %s162_s17 = smov 128   ;;  %s163_s18 = smov 8  }
   0x5   :  { %22 = dma.hbm_to_vmem [thread:$0]  %s15_s11, 512, %s17_s13, [#allocation3], %s162_s17, %s162_s17, %s163_s18  }
   0x6   :  { %s164_s19 = smov [#allocation5]  }
   0x7   :  { %s29_s20 = sshll.u32 %s164_s19, 4  ;;  %s30_s20 = int_to_ptr.vmem [resolvable:$true] %s29_s20 }
   0x8   :  { %35 = dma.hbm_to_vmem [thread:$0]  %s28_s16, 256, %s30_s20, [#allocation6], %s162_s17, %s162_s17, %s163_s18  }
   0x9   :  { %155 = dma.done.wait [#allocation3], 512  }
   0xa   :  { %156 = vsyncadd [#allocation3], 4294966784 }
   0xb   :  { %157 = dma.done.wait [#allocation6], 256  }
   0xc   :  { %158 = vsyncadd [#allocation6], 4294967040  ;;  %v44_v0 = vld [vmem:[#allocation2] sm:$0xff]  ;;  %v45_v2 = vld [vmem:[#allocation2 + $0x8] sm:$0xff]  ;;  %s165_s0 = smov [#allocation7]   ;;  %s64_s23 = sshll.u32 %s201_s2, 4  ;;  %s65_s23 = int_to_ptr.hbm [resolvable:$true] %s64_s23 }
   0xd   :  { %v48_v1 = vld [vmem:[#allocation5] sm:$0xff]  ;;  %v49_v4 = vld [vmem:[#allocation5 + $0x8] sm:$0xff]  ;;  %v46_v5 = vld [vmem:[#allocation2 + $0x10] sm:$0xff]  ;;  %s62_s1 = sshll.u32 %s165_s0, 4  ;;  %s63_s1 = int_to_ptr.vmem [resolvable:$true] %s62_s1 }
   0xe   :  { %v50_v3 = vadd.f32 %v48_v1, %v44_v0  ;;  %v47_v6 = vld [vmem:[#allocation2 + $0x18] sm:$0xff]  ;;  %v51_v7 = vadd.f32 %v49_v4, %v45_v2  ;;  %v52_v8 = vadd.f32 %v48_v1, %v46_v5 }
   0xf   :  { %v53_v9 = vadd.f32 %v49_v4, %v47_v6 }
  0x10   :  { %54 = vst [vmem:[#allocation7] sm:$0xff] %v50_v3 }
  0x11   :  { %55 = vst [vmem:[#allocation7 + $0x8] sm:$0xff] %v51_v7 }
  0x12   :  { %56 = vst [vmem:[#allocation7 + $0x10] sm:$0xff] %v52_v8 }
  0x13   :  { %57 = vst [vmem:[#allocation7 + $0x18] sm:$0xff] %v53_v9 }
  0x14   :  { %70 = dma.vmem_to_hbm [thread:$0]  %s63_s1, 512, %s65_s23, [#allocation4], %s162_s17, %s162_s17, %s163_s18  }
  0x15   :  { %159 = dma.done.wait [#allocation4], 512  }
  0x16   :  { %160 = vsyncadd [#allocation4], 4294966784 }
  0x17   :  { %75 = vsyncpa [#allocation3], 1 }
  0x18   :  { %76 = vsyncpa [#allocation6], 1 }
  0x19   :  { %77 = vsyncpa [#allocation4], 1 }

</bundles_post_ra>
